<compile_context>
chip_gen: v6e
topology: v6e:2x2x1
jax: 0.10.0
libtpu: 0.0.40
codegen_flags: <defaults>
</compile_context>

<pallas_src>
import functools

import jax
import jax.numpy as jnp
from jax import lax
from jax.experimental import pallas as pl
from jax.experimental.pallas import tpu as pltpu


# ---------------------------------------------------------------------------
# Kernel: fused idft1 + nonlinearity + idft2 for a block of TB batch elements
# ---------------------------------------------------------------------------
def gift2_kernel(x_ref, w1_ref, b1_ref, w2_ref, b2_ref, o_ref, y1_ref, *,
                 nl, tb, nch_int, nch_out, nrow, ncol):
    """Refs (per grid step, TB batch elements):
      x_ref  : (tb, nch_in*nrow, ncol)       rows (ic, r), lanes w       [input dtype]
      w1_ref : (nch_int*nrow, nch_in*nrow)   rows (c, k),  cols (ic, r)  [compute dtype]
      b1_ref : (nch_int*nrow, 1)                                          [f32]
      w2_ref : (nch_int*ncol, nch_out*ncol)  rows (c, w),  lanes (c2, m) [compute dtype]
      b2_ref : (1, nch_out*ncol)                                          [f32]
      o_ref  : (tb, nch_out, nrow, ncol)     NCHW output block           [input dtype]
      y1_ref : VMEM scratch (tb*nrow, nch_int*ncol)  rows (b, k), lanes (c, w)
    """
    w1 = w1_ref[...]
    b1 = b1_ref[...]

    # ---- Stage 1: generalised row transform, one MXU matmul per batch element,
    # contracting (ic, r).  The (c,k) x (w) result is re-laid out to rows (b,k),
    # lanes (c,w) while being written into the VMEM scratch, so stage 2 becomes
    # a single matmul.  Slices are static and tile-aligned when nrow % 8 == 0;
    # ref writes bound the per-iteration vreg live ranges.
    for b in range(tb):                                       # tb is small & static
        xb = x_ref[b].astype(w1.dtype)                        # (nch_in*nrow, ncol)
        y = jnp.dot(w1, xb, preferred_element_type=jnp.float32) + b1
        if nl == "tanh":
            y = jnp.tanh(y)
        elif nl == "relu":
            y = jnp.maximum(y, 0.0)
        elif nl == "sigmoid":
            y = jax.nn.sigmoid(y)
        # nl is None -> identity
        yc = y.astype(y1_ref.dtype)
        if nch_int == 1:
            y1_ref[b * nrow:(b + 1) * nrow, :] = yc
        else:
            y1_ref[b * nrow:(b + 1) * nrow, :] = jnp.concatenate(
                [yc[c * nrow:(c + 1) * nrow, :] for c in range(nch_int)], axis=-1)

    # ---- Stage 2: generalised column transform as ONE matmul:
    # (tb*nrow, nch_int*ncol) @ (nch_int*ncol, nch_out*ncol), f32 accumulation.
    out = jnp.dot(y1_ref[...], w2_ref[...],
                  preferred_element_type=jnp.float32) + b2_ref[...]
    out = out.astype(o_ref.dtype)                             # (tb*nrow, nch_out*ncol)

    # ---- Store directly in NCHW: per output channel c2, take its ncol lanes and
    # drop them into o_ref[:, c2] (no wrapper-side transpose / extra HBM pass).
    for c2 in range(nch_out):
        o_ref[:, c2:c2 + 1, :, :] = (
            out[:, c2 * ncol:(c2 + 1) * ncol].reshape(tb, 1, nrow, ncol))


# ---------------------------------------------------------------------------
# Batch-block size heuristic
# ---------------------------------------------------------------------------
def _pick_tb(batch, nrow, per_batch_bytes, budget_bytes):
    """Divisor of `batch` that (a) fits the VMEM budget, (b) preferably gives a
    stage-2 M = tb*nrow >= 256 while keeping >= 2 grid steps (both v7x cores),
    (c) never unrolls absurdly."""
    cands = [d for d in range(1, batch + 1)
             if batch % d == 0 and d * per_batch_bytes <= budget_bytes and d <= 64]
    if not cands:
        return 1
    good = [d for d in cands if d * nrow >= 256 and batch // d >= 2]
    if good:
        return min(good)
    good = [d for d in cands if d * nrow >= 256]
    if good:
        return min(good)
    # MXU rows are underfilled regardless; keep >= 2 grid steps for megacore.
    two_step = [d for d in cands if batch // d >= 2]
    return max(two_step) if two_step else max(cands)


# ---------------------------------------------------------------------------
# Wrapper
# ---------------------------------------------------------------------------
def gift2_forward(x_nchw, params, *, nl=None, compute_dtype=jnp.bfloat16):
    """GeneralisedIFT2Layer.forward (kernel_size=1, batch_norm=False).

    x_nchw : (B, nch_in, nrow, ncol) float32
    params : dict with torch-layout conv weights
             w1 : (nch_int*nrow, nch_in,  nrow, 1)
             w2 : (nch_out*ncol, nch_int, ncol, 1)
             b1 : (nch_int*nrow,) or None
             b2 : (nch_out*ncol,) or None
    compute_dtype : dtype of the MXU operands (accumulation is always f32; bias,
                    nonlinearity and the final store stay f32).
    returns (B, nch_out, nrow, ncol) in x_nchw.dtype
    """
    if nl not in (None, "tanh", "relu", "sigmoid"):
        raise ValueError(f"unsupported nonlinearity: {nl}")

    B, nch_in, nrow, ncol = x_nchw.shape
    w1, w2 = params["w1"], params["w2"]
    if w1.shape[-1] != 1 or w2.shape[-1] != 1:
        # TODO(synk): kernel_size > 1 (SAME-padded 1-D taps) not implemented.
        raise NotImplementedError("kernel_size > 1 is not supported")
    nch_int = w1.shape[0] // nrow
    nch_out = w2.shape[0] // ncol
    ck1 = nch_int * nrow          # stage-1 rows  (c, k)
    kint = nch_int * ncol         # stage-2 K     (c, w)
    c2m = nch_out * ncol          # stage-2 lanes (c2, m)

    # Flatten weights once (tiny arrays): both stages become plain 2-D matmuls and
    # the inter-stage permute is absorbed into the flattening.
    w1mat = w1[:, :, :, 0].reshape(ck1, nch_in * nrow).astype(compute_dtype)
    w2mat = jnp.transpose(w2[:, :, :, 0], (1, 2, 0)).reshape(kint, c2m).astype(compute_dtype)

    b1 = params.get("b1")
    b1 = (jnp.zeros((ck1,), jnp.float32) if b1 is None
          else b1.astype(jnp.float32)).reshape(ck1, 1)
    b2 = params.get("b2")
    b2 = (jnp.zeros((c2m,), jnp.float32) if b2 is None
          else b2.astype(jnp.float32)).reshape(1, c2m)

    # Pure reshape of NCHW (no HBM pass): rows (ic, r), lanes = columns.
    x_flat = x_nchw.reshape(B, nch_in * nrow, ncol)

    c_item = jnp.dtype(compute_dtype).itemsize
    x_item = jnp.dtype(x_nchw.dtype).itemsize
    # Per-batch VMEM: double-buffered input & output blocks + y1 scratch slice.
    per_b = 2 * (nch_in * nrow * ncol + nch_out * nrow * ncol) * x_item \
        + nrow * kint * c_item
    weight_bytes = 2 * (w1mat.size + w2mat.size) * c_item + 2 * (b1.size + b2.size) * 4
    budget = (24 << 20) - weight_bytes          # conservative for v7x (64 MiB / TC)
    tb = _pick_tb(B, nrow, per_b, budget)
    grid = (B // tb,)

    flops = 2 * B * (ck1 * nch_in * nrow * ncol + nrow * kint * c2m)
    transcendentals = B * nch_int * nrow * ncol if nl in ("tanh", "sigmoid") else 0
    bytes_accessed = ((x_flat.size + B * nch_out * nrow * ncol) * x_item
                      + (w1mat.size + w2mat.size) * c_item
                      + (b1.size + b2.size) * 4)

    kern = functools.partial(gift2_kernel, nl=nl, tb=tb, nch_int=nch_int,
                             nch_out=nch_out, nrow=nrow, ncol=ncol)
    out = pl.pallas_call(
        kern,
        out_shape=jax.ShapeDtypeStruct((B, nch_out, nrow, ncol), x_nchw.dtype),
        grid=grid,
        in_specs=[
            pl.BlockSpec((tb, nch_in * nrow, ncol), lambda i: (i, 0, 0)),
            pl.BlockSpec((ck1, nch_in * nrow), lambda i: (0, 0)),
            pl.BlockSpec((ck1, 1), lambda i: (0, 0)),
            pl.BlockSpec((kint, c2m), lambda i: (0, 0)),
            pl.BlockSpec((1, c2m), lambda i: (0, 0)),
        ],
        out_specs=pl.BlockSpec((tb, nch_out, nrow, ncol), lambda i: (i, 0, 0, 0)),
        scratch_shapes=[pltpu.VMEM((tb * nrow, kint), compute_dtype)],
        compiler_params=pltpu.CompilerParams(
            dimension_semantics=("parallel",),
            vmem_limit_bytes=48 * 1024 * 1024),
        cost_estimate=pl.CostEstimate(flops=flops,
                                      transcendentals=transcendentals,
                                      bytes_accessed=bytes_accessed),
    )(x_flat, w1mat, b1, w2mat, b2)
    return out


# ---------------------------------------------------------------------------
# Deterministic parameter construction (matches module __init__)
# ---------------------------------------------------------------------------
def fourier_weight(N, ksize=1):
    """init_fourier_ (norm='ortho') for a Conv2d(2, 2*N, (N, ksize)) weight."""
    n = jnp.arange(N, dtype=jnp.float32)
    k = jnp.arange(N, dtype=jnp.float32)
    ang = 2.0 * jnp.pi * jnp.outer(k, n) / N
    cos, sin = jnp.cos(ang), jnp.sin(ang)
    w = jnp.zeros((2 * N, 2, N, ksize), jnp.float32)
    c = ksize // 2
    w = w.at[:N, 0, :, c].set(cos)
    w = w.at[:N, 1, :, c].set(-sin)
    w = w.at[N:, 0, :, c].set(sin)
    w = w.at[N:, 1, :, c].set(cos)
    return w / jnp.sqrt(jnp.float32(N))


# ---------------------------------------------------------------------------
# Pure-JAX reference mirroring the PyTorch forward (for sanity check)
# ---------------------------------------------------------------------------
def ref_forward(X, w1, b1, w2, b2, nl=None):
    B, nch_in, nrow, ncol = X.shape
    nch_int = w1.shape[0] // nrow
    nch_out = w2.shape[0] // ncol

    y = lax.conv_general_dilated(
        X, w1, (1, 1), ((0, 0), (0, 0)),
        dimension_numbers=("NCHW", "OIHW", "NCHW"),
        precision=lax.Precision.HIGHEST)
    if b1 is not None:
        y = y + b1[None, :, None, None]
    y = y.reshape(B, nch_int, nrow, ncol).transpose(0, 1, 3, 2)

    if nl == "tanh":
        y = jnp.tanh(y)
    elif nl == "relu":
        y = jnp.maximum(y, 0.0)
    elif nl == "sigmoid":
        y = jax.nn.sigmoid(y)

    y = lax.conv_general_dilated(
        y, w2, (1, 1), ((0, 0), (0, 0)),
        dimension_numbers=("NCHW", "OIHW", "NCHW"),
        precision=lax.Precision.HIGHEST)
    if b2 is not None:
        y = y + b2[None, :, None, None]
    return y.reshape(B, nch_out, ncol, nrow).transpose(0, 1, 3, 2)


if __name__ == "__main__":
    B, nch, nrow, ncol = 4, 2, 16, 16
    key = jax.random.PRNGKey(0)
    kx, kw1, kw2, kb1, kb2 = jax.random.split(key, 5)
    x = jax.random.normal(kx, (B, nch, nrow, ncol), jnp.float32)

    # --- Config 1: module defaults (Fourier init, no bias, no nl) == ortho 2D IDFT
    w1f = fourier_weight(nrow, 1)
    w2f = fourier_weight(ncol, 1)
    p_fourier = {"w1": w1f, "w2": w2f, "b1": None, "b2": None}

    # f32 MXU path: tight tolerance against the conv reference.
    fwd32 = jax.jit(functools.partial(gift2_forward, nl=None,
                                      compute_dtype=jnp.float32))
    out32 = jax.block_until_ready(fwd32(x, p_fourier))
    ref = ref_forward(x, w1f, None, w2f, None, nl=None)
    assert out32.shape == (B, nch, nrow, ncol)
    assert jnp.allclose(out32, ref, atol=2e-3, rtol=2e-3), float(
        jnp.max(jnp.abs(out32 - ref)))

    # Semantic check: Fourier init reproduces the orthonormal 2D inverse DFT.
    xc = x[:, 0] + 1j * x[:, 1]
    f = jnp.fft.ifft2(xc, norm="ortho")
    fft_ref = jnp.stack([f.real, f.imag], axis=1)
    assert jnp.allclose(out32, fft_ref, atol=2e-3, rtol=2e-3), float(
        jnp.max(jnp.abs(out32 - fft_ref)))

    # bf16 MXU operands (perf default), f32 accumulation: looser tolerance.
    fwd_bf = jax.jit(functools.partial(gift2_forward, nl=None,
                                       compute_dtype=jnp.bfloat16))
    out_bf = jax.block_until_ready(fwd_bf(x, p_fourier))
    assert jnp.allclose(out_bf, ref, atol=3e-2, rtol=3e-2), float(
        jnp.max(jnp.abs(out_bf - ref)))

    # --- Config 2: generalised transform (random weights + bias + tanh), bf16 MXU.
    w1g = 0.1 * jax.random.normal(kw1, (nch * nrow, nch, nrow, 1), jnp.float32)
    w2g = 0.1 * jax.random.normal(kw2, (nch * ncol, nch, ncol, 1), jnp.float32)
    b1g = 0.1 * jax.random.normal(kb1, (nch * nrow,), jnp.float32)
    b2g = 0.1 * jax.random.normal(kb2, (nch * ncol,), jnp.float32)
    p_gen = {"w1": w1g, "b1": b1g, "w2": w2g, "b2": b2g}
    fwd_t = jax.jit(functools.partial(gift2_forward, nl="tanh",
                                      compute_dtype=jnp.bfloat16))
    out2 = jax.block_until_ready(fwd_t(x, p_gen))
    ref2 = ref_forward(x, w1g, b1g, w2g, b2g, nl="tanh")
    assert jnp.allclose(out2, ref2, atol=3e-2, rtol=3e-2), float(
        jnp.max(jnp.abs(out2 - ref2)))

    print("KERNEL_OK")
</pallas_src>

<mosaic_0001>
module attributes {stable_mosaic.version = 11 : i64} {
  func.func @gift2_kernel(%arg0: i32, %arg1: memref<2x32x16xf32, #tpu.memory_space<vmem>>, %arg2: memref<32x32xf32, #tpu.memory_space<vmem>>, %arg3: memref<32x1xf32, #tpu.memory_space<vmem>>, %arg4: memref<32x32xf32, #tpu.memory_space<vmem>>, %arg5: memref<1x32xf32, #tpu.memory_space<vmem>>, %arg6: memref<2x2x16x16xf32, #tpu.memory_space<vmem>>, %arg7: memref<32x32xf32, #tpu.memory_space<vmem>>) attributes {dimension_semantics = [#tpu.dimension_semantics<parallel>], iteration_bounds = array<i64: 2>, scalar_prefetch = 0 : i64, scratch_operands = 1 : i64, tpu.core_type = #tpu.core_type<tc>, window_params = [{transform_indices = @transform_0, window_bounds = array<i64: 2, 32, 16>}, {pipeline_mode = #tpu.pipeline_mode<synchronous>, transform_indices = @transform_1, window_bounds = array<i64: 32, 32>}, {pipeline_mode = #tpu.pipeline_mode<synchronous>, transform_indices = @transform_2, window_bounds = array<i64: 32, 1>}, {pipeline_mode = #tpu.pipeline_mode<synchronous>, transform_indices = @transform_3, window_bounds = array<i64: 32, 32>}, {pipeline_mode = #tpu.pipeline_mode<synchronous>, transform_indices = @transform_4, window_bounds = array<i64: 1, 32>}, {transform_indices = @transform_5, window_bounds = array<i64: 2, 2, 16, 16>}]} {
    %c0 = arith.constant 0 : index
    %c0_0 = arith.constant 0 : index
    %0 = vector.load %arg2[%c0, %c0_0] : memref<32x32xf32, #tpu.memory_space<vmem>>, vector<32x32xf32>
    %c0_1 = arith.constant 0 : index
    %c0_2 = arith.constant 0 : index
    %1 = vector.load %arg3[%c0_1, %c0_2] : memref<32x1xf32, #tpu.memory_space<vmem>>, vector<32x1xf32>
    %c0_3 = arith.constant 0 : index
    %c0_4 = arith.constant 0 : index
    %c0_5 = arith.constant 0 : index
    %2 = vector.load %arg1[%c0_3, %c0_4, %c0_5] : memref<2x32x16xf32, #tpu.memory_space<vmem>>, vector<1x32x16xf32>
    %3 = vector.shape_cast %2 : vector<1x32x16xf32> to vector<32x16xf32>
    %cst = arith.constant dense<0.000000e+00> : vector<32x16xf32>
    %4 = tpu.matmul %0, %3, %cst {dimension_numbers = #tpu.dot_dimension_numbers<[1], [0], [0], [1], [0, 0, 1, 1], [], []>} : vector<32x32xf32>, vector<32x16xf32>, vector<32x16xf32> -> vector<32x16xf32>
    %5 = vector.broadcast %1 : vector<32x1xf32> to vector<32x16xf32>
    %6 = arith.addf %4, %5 : vector<32x16xf32>
    %7 = vector.extract_strided_slice %6 {offsets = [0, 0], sizes = [16, 16], strides = [1, 1]} : vector<32x16xf32> to vector<16x16xf32>
    %8 = vector.extract_strided_slice %6 {offsets = [16, 0], sizes = [16, 16], strides = [1, 1]} : vector<32x16xf32> to vector<16x16xf32>
    %9 = tpu.concatenate %7, %8 in 1 : vector<16x16xf32>, vector<16x16xf32> -> vector<16x32xf32>
    %c0_6 = arith.constant 0 : index
    %c0_7 = arith.constant 0 : index
    %10 = vector.load %arg7[%c0_6, %c0_7] : memref<32x32xf32, #tpu.memory_space<vmem>>, vector<16x32xf32>
    tpu.vector_store %arg7[%c0_6, %c0_7], %9 {strides = array<i32>} : memref<32x32xf32, #tpu.memory_space<vmem>>, vector<16x32xf32>,
    %c1 = arith.constant 1 : index
    %c0_8 = arith.constant 0 : index
    %c0_9 = arith.constant 0 : index
    %11 = vector.load %arg1[%c1, %c0_8, %c0_9] : memref<2x32x16xf32, #tpu.memory_space<vmem>>, vector<1x32x16xf32>
    %12 = vector.shape_cast %11 : vector<1x32x16xf32> to vector<32x16xf32>
    %cst_10 = arith.constant dense<0.000000e+00> : vector<32x16xf32>
    %13 = tpu.matmul %0, %12, %cst_10 {dimension_numbers = #tpu.dot_dimension_numbers<[1], [0], [0], [1], [0, 0, 1, 1], [], []>} : vector<32x32xf32>, vector<32x16xf32>, vector<32x16xf32> -> vector<32x16xf32>
    %14 = vector.broadcast %1 : vector<32x1xf32> to vector<32x16xf32>
    %15 = arith.addf %13, %14 : vector<32x16xf32>
    %16 = vector.extract_strided_slice %15 {offsets = [0, 0], sizes = [16, 16], strides = [1, 1]} : vector<32x16xf32> to vector<16x16xf32>
    %17 = vector.extract_strided_slice %15 {offsets = [16, 0], sizes = [16, 16], strides = [1, 1]} : vector<32x16xf32> to vector<16x16xf32>
    %18 = tpu.concatenate %16, %17 in 1 : vector<16x16xf32>, vector<16x16xf32> -> vector<16x32xf32>
    %c16 = arith.constant 16 : index
    %c0_11 = arith.constant 0 : index
    %19 = vector.load %arg7[%c16, %c0_11] : memref<32x32xf32, #tpu.memory_space<vmem>>, vector<16x32xf32>
    tpu.vector_store %arg7[%c16, %c0_11], %18 {strides = array<i32>} : memref<32x32xf32, #tpu.memory_space<vmem>>, vector<16x32xf32>,
    %c0_12 = arith.constant 0 : index
    %c0_13 = arith.constant 0 : index
    %20 = vector.load %arg7[%c0_12, %c0_13] : memref<32x32xf32, #tpu.memory_space<vmem>>, vector<32x32xf32>
    %c0_14 = arith.constant 0 : index
    %c0_15 = arith.constant 0 : index
    %21 = vector.load %arg4[%c0_14, %c0_15] : memref<32x32xf32, #tpu.memory_space<vmem>>, vector<32x32xf32>
    %cst_16 = arith.constant dense<0.000000e+00> : vector<32x32xf32>
    %22 = tpu.matmul %20, %21, %cst_16 {dimension_numbers = #tpu.dot_dimension_numbers<[1], [0], [0], [1], [0, 0, 1, 1], [], []>} : vector<32x32xf32>, vector<32x32xf32>, vector<32x32xf32> -> vector<32x32xf32>
    %c0_17 = arith.constant 0 : index
    %c0_18 = arith.constant 0 : index
    %23 = vector.load %arg5[%c0_17, %c0_18] : memref<1x32xf32, #tpu.memory_space<vmem>>, vector<1x32xf32>
    %24 = vector.broadcast %23 : vector<1x32xf32> to vector<32x32xf32>
    %25 = arith.addf %22, %24 : vector<32x32xf32>
    %26 = vector.extract_strided_slice %25 {offsets = [0, 0], sizes = [32, 16], strides = [1, 1]} : vector<32x32xf32> to vector<32x16xf32>
    %27 = vector.shape_cast %26 : vector<32x16xf32> to vector<2x1x16x16xf32>
    %c0_19 = arith.constant 0 : index
    %c0_20 = arith.constant 0 : index
    %c0_21 = arith.constant 0 : index
    %c0_22 = arith.constant 0 : index
    %28 = vector.load %arg6[%c0_19, %c0_20, %c0_21, %c0_22] : memref<2x2x16x16xf32, #tpu.memory_space<vmem>>, vector<2x1x16x16xf32>
    tpu.vector_store %arg6[%c0_19, %c0_20, %c0_21, %c0_22], %27 {strides = array<i32>} : memref<2x2x16x16xf32, #tpu.memory_space<vmem>>, vector<2x1x16x16xf32>,
    %29 = vector.extract_strided_slice %25 {offsets = [0, 16], sizes = [32, 16], strides = [1, 1]} : vector<32x32xf32> to vector<32x16xf32>
    %30 = vector.shape_cast %29 : vector<32x16xf32> to vector<2x1x16x16xf32>
    %c0_23 = arith.constant 0 : index
    %c1_24 = arith.constant 1 : index
    %c0_25 = arith.constant 0 : index
    %c0_26 = arith.constant 0 : index
    %31 = vector.load %arg6[%c0_23, %c1_24, %c0_25, %c0_26] : memref<2x2x16x16xf32, #tpu.memory_space<vmem>>, vector<2x1x16x16xf32>
    tpu.vector_store %arg6[%c0_23, %c1_24, %c0_25, %c0_26], %30 {strides = array<i32>} : memref<2x2x16x16xf32, #tpu.memory_space<vmem>>, vector<2x1x16x16xf32>,
    return
  }
  func.func @transform_0(%arg0: i32) -> (i32, i32, i32) {
    %c0_i32 = arith.constant 0 : i32
    %c0_i32_0 = arith.constant 0 : i32
    %c0_i32_1 = arith.constant 0 : i32
    return %arg0, %c0_i32, %c0_i32_0 : i32, i32, i32
  }
  func.func @transform_1(%arg0: i32) -> (i32, i32) {
    %c0_i32 = arith.constant 0 : i32
    %c0_i32_0 = arith.constant 0 : i32
    %c0_i32_1 = arith.constant 0 : i32
    return %c0_i32, %c0_i32_0 : i32, i32
  }
  func.func @transform_2(%arg0: i32) -> (i32, i32) {
    %c0_i32 = arith.constant 0 : i32
    %c0_i32_0 = arith.constant 0 : i32
    %c0_i32_1 = arith.constant 0 : i32
    return %c0_i32, %c0_i32_0 : i32, i32
  }
  func.func @transform_3(%arg0: i32) -> (i32, i32) {
    %c0_i32 = arith.constant 0 : i32
    %c0_i32_0 = arith.constant 0 : i32
    %c0_i32_1 = arith.constant 0 : i32
    return %c0_i32, %c0_i32_0 : i32, i32
  }
  func.func @transform_4(%arg0: i32) -> (i32, i32) {
    %c0_i32 = arith.constant 0 : i32
    %c0_i32_0 = arith.constant 0 : i32
    %c0_i32_1 = arith.constant 0 : i32
    return %c0_i32, %c0_i32_0 : i32, i32
  }
  func.func @transform_5(%arg0: i32) -> (i32, i32, i32, i32) {
    %c0_i32 = arith.constant 0 : i32
    %c0_i32_0 = arith.constant 0 : i32
    %c0_i32_1 = arith.constant 0 : i32
    %c0_i32_2 = arith.constant 0 : i32
    return %arg0, %c0_i32, %c0_i32_0, %c0_i32_1 : i32, i32, i32, i32
  }
}

</mosaic_0001>

<bundles_post_ra>
// kernel: gift2_forward.1
= control target key start
LH: loop header
LB: loop body
LE: loop exit
PB: predicated region body
PF: predicated region fallthrough
CT: control target
= control target key end

     0   :  { %10 = vsyncpa [#allocation4], 0  ;;  %s1244_s0 = inlined_call_operand.hbm [shape: f32[4,32,16], index: 0, kind: input, shape index: {}]   ;;  %s1245_s1 = inlined_call_operand.vmem [shape: f32[32,32], index: 1, kind: input, shape index: {}]   ;;  %s1246_s2 = inlined_call_operand.vmem [shape: f32[32,1], index: 2, kind: input, shape index: {}]   ;;  %s1247_s3 = inlined_call_operand.vmem [shape: f32[32,32], index: 3, kind: input, shape index: {}]   ;;  %s1248_s4 = inlined_call_operand.vmem [shape: f32[1,32], index: 4, kind: input, shape index: {}]   ;;  %s1249_s5 = inlined_call_operand.hbm [shape: f32[4,2,16,16], index: 5, kind: output, shape index: {}]  }
   0x1   :  { %12 = vsyncpa [#allocation4 + $0x1], 0 }
   0x2   :  { %13 = vsyncpa [#allocation5], 0 }
   0x3   :  { %15 = vsyncpa [#allocation5 + $0x1], 0  ;;  %s1019_s18 = smov 0   ;;  %s1021_s19 = smov 0  }
   0x4   :  { %s1023_s20 = smov 0   ;;  %s1025_s21 = smov 0  }
   0x5 LB: > { %s1040_s22 = sadd.s32 4294967295, %s978_s21   ;;  %s716_s23 = sadd.s32 4294967294, %s978_s21   ;;  %s978_s21 = sphi %s1025_s21, %s1264_s21   ;;  %s974_s20 = sphi %s1023_s20, %s1263_s20   ;;  %s970_s19 = sphi %s1021_s19, %s1262_s19   ;;  %s966_s18 = sphi %s1019_s18, %s1261_s18  }
   0x6   : > { %s1044_s24 = sadd.s32 1, %s978_s21   ;;  %s28_s25 = sadd.s32 1, %s974_s20 }
   0x7   : > { %s25_s26 = ssub.s32 %s978_s21, %s1044_s24  ;;  %p35_p0 = scmp.ne.s32.totalorder %s974_s20, %s970_s19 }
   0x8   : > { %p26_p1 = scmp.eq.s32.totalorder %s25_s26, 0  ;;  %p36_p2 = scmp.eq.s32.totalorder %s978_s21, 0 }
   0x9   : > { %p41_p3 = scmp.ne.s32.totalorder %s970_s19, %s966_s18  ;;  %p42_p4 = scmp.eq.s32.totalorder %s1040_s22, 0 }
   0xa   : > { %s1056_s27 = scalar_select %p26_p1, %s974_s20, %s28_s25  }
   0xb   : > { %p1058_p5 = por %p36_p2, %p35_p0  ;;  %p1062_p6 = por %p42_p4, %p41_p3 }
   0xc   : > { %p149_p7 = scmp.eq.s32.totalorder %s1040_s22, 1  ;;  %p155_p8 = scmp.eq.s32.totalorder %s716_s23, 1 }
   0xd   : > { %s1253_s29 = scalar_select %p1062_p6, 1, 0 }
   0xe   : > { %p843_p10 = scmp.lt.s32.totalorder %s978_s21, 2  ;;  %p1069_p11 = por %p149_p7, %p35_p0 }
   0xf   : > { %p1073_p12 = por %p155_p8, %p41_p3  ;;  %s187_s7 = sand.u32 1, %s974_s20  }
  0x10   : > { %s1254_s30 = scalar_select %p1069_p11, 1, 0 }
  0x11   : > { %s1255_s6 = scalar_select %p1073_p12, 1, 0 }
  0x12   : > { %s754_s8 = sshll.u32 %s978_s21, 10  ;;  %s719_s9 = sshll.u32 %s187_s7, 6 }
  0x13   : > { %s1082_s12 = scalar_lea.hbm %s1244_s0, %s754_s8  ;;  %s191_s13 = scalar_lea.vmem [#allocation3], %s719_s9 }
  0x14   : > { %s199_s14 = sshll.u32 %s191_s13, 4  ;;  %p1086_p13 = pnand %p843_p10, %p1058_p5  ;;  %s1090_s14 = int_to_ptr.vmem [resolvable:$true] %s199_s14 }
  0x15   : > { %s1092_s16 = scalar_lea.sflag [#allocation4], %s187_s7  ;;  %s886_s17 = scalar_lea.hbm %s1082_s12, 1024 }
  0x16   : > { %p887_p0 = scmp.ne.s32.totalorder %s1082_s12, %s886_s17  ;;  %p888_p1 = pneg %p1086_p13 }
  0x17   : > { %s891_s26 = scalar_lea.hbm %s1244_s0, 2048  ;;  %p892_p4 = scmp.lt.s32.totalorder %s1082_s12, %s1244_s0 }
  0x18   : > { %p889_p2 = pnand %p888_p1, %p887_p0  ;;  %p893_p5 = scmp.lt.s32.totalorder %s891_s26, %s886_s17 }
  0x1a   : > { %p890_p3 = pneg %p889_p2  ;;  %p894_p7 = por %p893_p5, %p892_p4 }
  0x1c   : > { %p895_p8 = pnand %p894_p7, %p890_p3 }
  0x1e   : > { %898 = shalt.err (!%p895_p8)
}
  0x1f   : > { %s899_s7 = scalar_lea.vmem %s1090_s14, 1024  ;;  %s980_s9 = smov [#allocation3]  }
  0x20   : > { %p900_p10 = scmp.ne.s32.totalorder %s1090_s14, %s899_s7  ;;  %s904_s10 = sshll.u32 %s980_s9, 4  ;;  %s905_s10 = int_to_ptr.vmem [resolvable:$false] %s904_s10 }
  0x21   : > { %s906_s11 = scalar_lea.vmem %s905_s10, 2048  ;;  %p907_p2 = scmp.lt.s32.totalorder %s1090_s14, %s905_s10 }
  0x22   : > { %p902_p9 = pnand %p900_p10, %p888_p1  ;;  %p908_p12 = scmp.lt.s32.totalorder %s906_s11, %s899_s7 }
  0x24   : > { %p903_p0 = pneg %p902_p9  ;;  %p909_p11 = por %p908_p12, %p907_p2 }
  0x26   : > { %p910_p6 = pnand %p909_p11, %p903_p0 }
  0x28   : > { %913 = shalt.err (!%p910_p6)
}
  0x29   : > { %s981_s13 = smov 128   ;;  %s982_s17 = smov 8  }
  0x2a   : > { %838 = dma.hbm_to_vmem [thread:$0]  (!%p1086_p13), %s1082_s12, 1024, %s1090_s14, %s1092_s16, %s981_s13, %s981_s13, %s982_s17  }
  0x2b   : > { %p723_p9 = scmp.ge.s32.totalorder %s978_s21, 1  ;;  %p207_p1 = scmp.lt.s32.totalorder %s978_s21, 3 }
  0x2d   : > { %p208_p3 = pnand %p723_p9, %p207_p1 }
  0x2e   : > { %s1116_s23 = sand.u32 (!%p208_p3), 1, %s970_s19   ;;  %p1257_p6 = scmp.ne.s32.totalorder (!%p208_p3), %s1253_s29, 0 }
  0x2f   : > { %211 = sbr.rel (%p208_p3) target bundleno = 723 (0x2d3), region = 40  ;;  %s724_s25 = sshll.u32 (!%p208_p3), %s1116_s23, 6 }
  0x30   : > { %s214_s26 = scalar_lea.sflag (!%p208_p3), [#allocation4], %s1116_s23  ;;  %s217_s28 = scalar_lea.vmem (!%p208_p3), [#allocation3], %s724_s25 }
  0x34   : > { %957 = dma.done.wait (%p1257_p6), %s214_s26, 1024  }
  0x35   : > { %959 = vsyncadd (%p1257_p6), %s214_s26, 4294966272  ;;  %v983_v0 = vmov 0   ;;  %v257_v1 = vld [vmem:[%s217_s28 + $0x18] sm:$0xff]  ;;  %v256_v3 = vld [vmem:[%s217_s28 + $0x10] sm:$0xff]  ;;  %vm278_vm0 = vcmask 261120   ;;  %s984_s13 = smov 16  }
  0x36   : > { %885 = vset.pattern.permute.xlu1 %v983_v0  ;;  %884 = vset.pattern.permute.xlu0 %v983_v0  ;;  %v733_v2 = vld [vmem:[%s217_s28 + $0x38] sm:$0xff]  ;;  %v732_v4 = vld [vmem:[%s217_s28 + $0x30] sm:$0xff]  ;;  %v255_v5 = vld [vmem:[%s217_s28 + $0x8] sm:$0xff]  ;;  %vm384_vm1 = vcmask 130048   ;;  %s985_s29 = smov 112   ;;  %p1258_p12 = scmp.ne.s32.totalorder %s1254_s30, 0 }
  0x37   : > { %781 = vmatprep.subr.mxu0 %v257_v1  ;;  %795 = vmatprep.subr.mxu1 %v733_v2  ;;  %v731_v6 = vld [vmem:[%s217_s28 + $0x28] sm:$0xff]  ;;  %v254_v7 = vld [vmem:[%s217_s28] sm:$0xff]  ;;  %v248_v11 = vld [vmem:[%s1245_s1 + $0x10] sm:$0xff]  ;;  %s986_s7 = smov [#allocation6]  }
  0x38   : > { %782 = vmatpush3.msra.mxu0 %v257_v1  ;;  %796 = vmatpush3.msra.mxu1 %v733_v2  ;;  %v730_v8 = vld [vmem:[%s217_s28 + $0x20] sm:$0xff]  ;;  %v247_v10 = vld [vmem:[%s1245_s1 + $0x8] sm:$0xff]  ;;  %v252_v13 = vld [vmem:[%s1246_s2 + $0x10] sm:$0xff]  ;;  %s243_s28 = scalar_lea.vmem [#allocation6], %s724_s25  ;;  %s756_s25 = sshll.u32 %s1040_s22, 10 }
  0x39   : > { %783 = vmatprep.subr.mxu0 %v256_v3  ;;  %797 = vmatprep.subr.mxu1 %v732_v4  ;;  %v246_v9 = vld [vmem:[%s1245_s1] sm:$0xff]  ;;  %v249_v14 = vld [vmem:[%s1245_s1 + $0x18] sm:$0xff]  ;;  %v251_v15 = vld [vmem:[%s1246_s2 + $0x8] sm:$0xff]  ;;  %s643_s12 = sshll.u32 %s243_s28, 4  ;;  %s1197_s16 = scalar_lea.hbm %s1249_s5, %s756_s25  ;;  %s1199_s12 = int_to_ptr.vmem [resolvable:$true] %s643_s12 }
  0x3a   : > { %784 = vmatpush3.msra.mxu0 %v256_v3  ;;  %798 = vmatpush3.msra.mxu1 %v732_v4  ;;  %v250_v12 = vld [vmem:[%s1246_s2] sm:$0xff]  ;;  %v253_v16 = vld [vmem:[%s1246_s2 + $0x18] sm:$0xff]  ;;  %v497_v21 = vld [vmem:[%s1247_s3 + $0x10] sm:$0xff]  ;;  %s629_s22 = scalar_lea.sflag [#allocation5], %s1116_s23  ;;  %s914_s8 = scalar_lea.vmem %s1199_s12, 1024 }
  0x3b   : > { %785 = vmatprep.subr.mxu0 %v255_v5  ;;  %799 = vmatprep.subr.mxu1 %v731_v6  ;;  %v498_v19 = vld [vmem:[%s1247_s3 + $0x18] sm:$0xff]  ;;  %v496_v24 = vld [vmem:[%s1247_s3 + $0x8] sm:$0xff]  ;;  %v495_v27 = vld [vmem:[%s1247_s3] sm:$0xff]  ;;  %p915_p11 = scmp.ne.s32.totalorder %s1199_s12, %s914_s8  ;;  %s918_s9 = sshll.u32 %s986_s7, 4  ;;  %s919_s9 = int_to_ptr.vmem [resolvable:$false] %s918_s9 }
  0x3c   : > { %786 = vmatpush3.msra.mxu0 %v255_v5  ;;  %800 = vmatpush3.msra.mxu1 %v731_v6  ;;  %v738_v53 = vld [vmem:[%s1248_s4] ss:$0 sm:$0xff]  ;;  %s920_s10 = scalar_lea.vmem %s919_s9, 2048  ;;  %p921_p5 = scmp.lt.s32.totalorder %s1199_s12, %s919_s9 }
  0x3d   : > { %787 = vmatprep.subr.mxu0 %v254_v7  ;;  %801 = vmatprep.subr.mxu1 %v730_v8  ;;  %p916_p13 = pnand %p915_p11, %p1258_p12  ;;  %p922_p7 = scmp.lt.s32.totalorder %s920_s10, %s914_s8 }
  0x3e   : > { %788 = vmatpush3.msra.mxu0 %v254_v7  ;;  %789 = vmatprep.mubr.msk.f32.mxu0 %vm278_vm0, %v246_v9 }
  0x3f   : > { %802 = vmatpush3.msra.mxu1 %v730_v8  ;;  %803 = vmatprep.mubr.msk.f32.mxu1 %vm278_vm0, %v246_v9  ;;  %p917_p4 = pneg %p916_p13  ;;  %p923_p8 = por %p922_p7, %p921_p5 }
  0x40   : > { %790 = vmatmul.mubr.msk.f32.vlgmr.msra.gmra.mxu0 %vm278_vm0, %v247_v10  ;;  %804 = vmatmul.mubr.msk.f32.vlgmr.msra.gmra.mxu1 %vm278_vm0, %v247_v10 }
  0x41   : > { %792 = vmatprep.mubr.msk.f32.mxu0 %vm278_vm0, %v248_v11  ;;  %806 = vmatprep.mubr.msk.f32.mxu1 %vm278_vm0, %v248_v11  ;;  %p924_p10 = pnand %p923_p8, %p917_p4 }
  0x42   : > { %260 = vperm.xlu1 %885, %v250_v12   ;;  %270 = vperm.xlu0 %884, %v252_v13  }
  0x43   : > { %809 = vmatprep.subr.mxu0 %v498_v19  ;;  %823 = vmatprep.subr.mxu1 %v498_v19 }
  0x44   : > { %793 = vmatmul.mubr.msk.f32.gmra.mxu0 %vm278_vm0, %v249_v14  ;;  %807 = vmatmul.mubr.msk.f32.gmra.mxu1 %vm278_vm0, %v249_v14 }
  0x45   : > { %810 = vmatpush3.msra.mxu0 %v498_v19  ;;  %827 = vmatpush3.msra.mxu1 %v498_v19 }
  0x46   : > { %265 = vperm.xlu1 %885, %v251_v15   ;;  %275 = vperm.xlu0 %884, %v253_v16  }
  0x47   : > { %811 = vmatprep.subr.mxu0 %v497_v21  ;;  %824 = vmatprep.subr.mxu1 %v497_v21 }
  0x48   : > { %812 = vmatpush3.msra.mxu0 %v497_v21  ;;  %828 = vmatpush3.msra.mxu1 %v497_v21 }
  0x49   : > { %813 = vmatprep.subr.mxu0 %v496_v24  ;;  %825 = vmatprep.subr.mxu1 %v496_v24 }
  0x4a   : > { %814 = vmatpush3.msra.mxu0 %v496_v24  ;;  %829 = vmatpush3.msra.mxu1 %v496_v24 }
  0x4b   : > { %815 = vmatprep.subr.mxu0 %v495_v27  ;;  %826 = vmatprep.subr.mxu1 %v495_v27 }
  0x4c   : > { %816 = vmatpush3.msra.mxu0 %v495_v27  ;;  %830 = vmatpush3.msra.mxu1 %v495_v27 }
  0xbd   : > { %v271_v20 = vpop.permute.xlu0 %270  ;;  %v261_v35 = vpop.permute.xlu1 %260 }
  0xc1   : > { %v276_v32 = vpop.permute.xlu0 %275  ;;  %v266_v36 = vpop.permute.xlu1 %265 }
 0x100   : > { %v791_v17 = vpop.f32.mrf.mxu0  ;;  %v805_v18 = vpop.f32.mrf.mxu1 }
 0x101   : > { %v363_v43 = vadd.f32 %v791_v17, %v266_v36  ;;  %v466_v44 = vadd.f32 %v805_v18, %v266_v36 }
 0x102   : > { %v357_v22 = vpop.f32.mrf.mxu0  ;;  %v460_v23 = vpop.f32.mrf.mxu1 }
 0x103   : > { %v358_v37 = vadd.f32 %v357_v22, %v261_v35  ;;  %v461_v38 = vadd.f32 %v460_v23, %v261_v35 }
 0x104   : > { %v794_v25 = vpop.f32.mrf.mxu0  ;;  %v808_v26 = vpop.f32.mrf.mxu1 }
 0x105   : > { %v373_v33 = vadd.f32 %v794_v25, %v276_v32  ;;  %v476_v34 = vadd.f32 %v808_v26, %v276_v32 }
 0x106   : > { %v367_v28 = vpop.f32.mrf.mxu0  ;;  %v470_v29 = vpop.f32.mrf.mxu1 }
 0x107   : > { %v368_v30 = vadd.f32 %v367_v28, %v271_v20  ;;  %v471_v31 = vadd.f32 %v470_v29, %v271_v20 }
 0x109   : > { %481 = vrot.lane.b32.xlu1 %v471_v31, %s984_s13  ;;  %378 = vrot.lane.b32.xlu0 %v368_v30, %s984_s13 }
 0x10d   : > { %483 = vrot.lane.b32.xlu1 %v476_v34, %s984_s13  ;;  %380 = vrot.lane.b32.xlu0 %v373_v33, %s984_s13 }
 0x17b   : > { %v482_v39 = vpop.permute.xlu1 %481  ;;  %v379_v40 = vpop.permute.xlu0 %378 }
 0x17c   : > { %v487_v41 = vsel %vm384_vm1, %v461_v38, %v482_v39  ;;  %v385_v42 = vsel %vm384_vm1, %v358_v37, %v379_v40 }
 0x17d   : > { %489 = vst.msk [vmem:[#allocation2 + $0x10] sm:$0xff] %vm278_vm0, %v487_v41  ;;  %387 = vst.msk [vmem:[#allocation2] sm:$0xff] %vm278_vm0, %v385_v42 }
 0x17f   : > { %v484_v45 = vpop.permute.xlu1 %483  ;;  %v381_v46 = vpop.permute.xlu0 %380 }
 0x180   : > { %v488_v47 = vsel %vm384_vm1, %v466_v44, %v484_v45  ;;  %v386_v48 = vsel %vm384_vm1, %v363_v43, %v381_v46 }
 0x181   : > { %490 = vst.msk [vmem:[#allocation2 + $0x18] sm:$0xff] %vm278_vm0, %v488_v47  ;;  %388 = vst.msk [vmem:[#allocation2 + $0x8] sm:$0xff] %vm278_vm0, %v386_v48 }
 0x184   : > { %v491_v49 = vld [vmem:[#allocation2] sm:$0xff]  ;;  %v493_v50 = vld [vmem:[#allocation2 + $0x10] sm:$0xff] }
 0x185   : > { %817 = vmatprep.mubr.msk.f32.mxu0 %vm278_vm0, %v491_v49  ;;  %820 = vmatprep.mubr.msk.f32.mxu1 %vm278_vm0, %v493_v50 }
 0x188   : > { %v492_v51 = vld [vmem:[#allocation2 + $0x8] sm:$0xff]  ;;  %v494_v52 = vld [vmem:[#allocation2 + $0x18] sm:$0xff] }
 0x189   : > { %818 = vmatmul.mubr.msk.f32.vlgmr.msra.gmra.mxu0 %vm278_vm0, %v492_v51  ;;  %821 = vmatmul.mubr.msk.f32.vlgmr.msra.gmra.mxu1 %vm278_vm0, %v494_v52 }
 0x249   : > { %v819_v54 = vpop.f32.mrf.mxu0  ;;  %v822_v55 = vpop.f32.mrf.mxu1 }
 0x24a   : > { %v590_v56 = vadd.f32 %v819_v54, %v738_v53  ;;  %v600_v57 = vadd.f32 %v822_v55, %v738_v53 }
 0x24b   : > { %v584_v58 = vpop.f32.mrf.mxu0  ;;  %v594_v59 = vpop.f32.mrf.mxu1 }
 0x24c   : > { %604 = vst.msk [vmem:[%s243_s28 + $0x8] sm:$0xff] %vm384_vm1, %v590_v56  ;;  %606 = vst.msk [vmem:[%s243_s28 + $0x28] sm:$0xff] %vm384_vm1, %v600_v57  ;;  %v585_v60 = vadd.f32 %v738_v53, %v584_v58  ;;  %v595_v61 = vadd.f32 %v738_v53, %v594_v59  ;;  %613 = vrot.lane.b32.xlu1 %v590_v56, %s985_s29 }
 0x24e   : > { %603 = vst.msk [vmem:[%s243_s28] sm:$0xff] %vm384_vm1, %v585_v60  ;;  %605 = vst.msk [vmem:[%s243_s28 + $0x20] sm:$0xff] %vm384_vm1, %v595_v61  ;;  %611 = vrot.lane.b32.xlu0 %v585_v60, %s985_s29 }
 0x250   : > { %617 = vrot.lane.b32.xlu1 %v600_v57, %s985_s29 }
 0x252   : > { %615 = vrot.lane.b32.xlu0 %v595_v61, %s985_s29 }
 0x2be   : > { %v614_v62 = vpop.permute.xlu1 %613 }
 0x2bf   : > { %744 = vst.msk [vmem:[%s243_s28 + $0x18] sm:$0xff] %vm384_vm1, %v614_v62 }
 0x2c0   : > { %v612_v63 = vpop.permute.xlu0 %611 }
 0x2c1   : > { %743 = vst.msk [vmem:[%s243_s28 + $0x10] sm:$0xff] %vm384_vm1, %v612_v63 }
 0x2c2   : > { %v618_v0 = vpop.permute.xlu1 %617 }
 0x2c3   : > { %746 = vst.msk [vmem:[%s243_s28 + $0x38] sm:$0xff] %vm384_vm1, %v618_v0 }
 0x2c4   : > { %v616_v1 = vpop.permute.xlu0 %615 }
 0x2c5   : > { %745 = vst.msk [vmem:[%s243_s28 + $0x30] sm:$0xff] %vm384_vm1, %v616_v1 }
 0x2c6   : > { %927 = shalt.err (!%p924_p10)
}
 0x2c7   : > { %s928_s11 = scalar_lea.hbm %s1197_s16, 1024  ;;  %s932_s26 = scalar_lea.hbm %s1249_s5, 2048 }
 0x2c8   : > { %p929_p0 = scmp.ne.s32.totalorder %s1197_s16, %s928_s11  ;;  %p933_p1 = scmp.lt.s32.totalorder %s1197_s16, %s1249_s5 }
 0x2c9   : > { %p934_p3 = scmp.lt.s32.totalorder %s932_s26, %s928_s11 }
 0x2ca   : > { %p930_p2 = pnand %p929_p0, %p1258_p12 }
 0x2cb   : > { %p935_p6 = por %p934_p3, %p933_p1 }
 0x2cc   : > { %p931_p9 = pneg %p930_p2 }
 0x2ce   : > { %p936_p11 = pnand %p935_p6, %p931_p9 }
 0x2d0   : > { %939 = shalt.err (!%p936_p11)
}
 0x2d1   : > { %s987_s25 = smov 128   ;;  %s988_s14 = smov 8  }
 0x2d2   : > { %833 = dma.vmem_to_hbm [thread:$0]  (%p1258_p12), %s1199_s12, 1024, %s1197_s16, %s629_s22, %s987_s25, %s987_s25, %s988_s14  }
 0x2d3 PF: > { %s658_s15 = sand.u32 1, %s966_s18   ;;  %p1259_p13 = scmp.ne.s32.totalorder %s1255_s6, 0 }
 0x2d4   : > { %p1260_p4 = scmp.ge.s32.totalorder %s978_s21, 2  ;;  %s659_s8 = scalar_lea.sflag [#allocation5], %s658_s15 }
 0x2d6   : > { %p840_p5 = pnand %p1260_p4, %p1259_p13 }
 0x2d8   : > { %p841_p7 = pneg %p840_p5 }
 0x2da   : > { %961 = dma.done.wait (%p841_p7), %s659_s8, 1024  }
 0x2db   : > { %963 = vsyncadd (%p841_p7), %s659_s8, 4294966272  ;;  %p18_p8 = scmp.ge.s32.totalorder %s1044_s24, 4   ;;  %s1261_s18 = smov %s970_s19 }
 0x2dc   : > { %s1262_s19 = smov %s974_s20  ;;  %s1263_s20 = smov %s1056_s27 }
 0x2dd   : > { %s1264_s21 = smov %s1044_s24  ;;  %20 = sbr.rel (!%p18_p8) target bundleno = 5 (0x5), region = 87 }
 0x2e2   :  { %664 = vsyncpa [#allocation4], 1 }
 0x2e3   :  { %666 = vsyncpa [#allocation4 + $0x1], 1 }
 0x2e4   :  { %667 = vsyncpa [#allocation5], 1 }
 0x2e5   :  { %669 = vsyncpa [#allocation5 + $0x1], 1 }

</bundles_post_ra>
